<compile_context>
chip_gen: v5e
topology: v5e:2x2
jax: 0.10.0
libtpu: 0.0.40
codegen_flags: <defaults>
</compile_context>

<pallas_src>
import numpy as np
import jax
import jax.numpy as jnp
from jax.experimental import pallas as pl
from jax.experimental.pallas import tpu as pltpu


def _reorg_kernel(x_ref, s_ref, o_ref):
    # x_ref: (TG, hs*W)    rows are (c, i) pairs, lanes are (p, w) pairs
    # s_ref: (hs*W, hs*W)  constant 0/1 permutation matrix (bf16)
    # o_ref: (K, TG, Ws)   K = hs*ws output channel groups
    K, _, ws_out = o_ref.shape
    x = x_ref[...]
    s = s_ref[...]

    if x.dtype == jnp.float32:
        # Exact f32 permutation on the MXU: split x into three non-overlapping
        # bf16 pieces (hi + mid + lo == x exactly); each MXU pass is exact for
        # a 0/1 matrix with f32 accumulation, and the f32 re-sum is exact.
        hi = x.astype(jnp.bfloat16)
        r1 = x - hi.astype(jnp.float32)
        mid = r1.astype(jnp.bfloat16)
        lo = (r1 - mid.astype(jnp.float32)).astype(jnp.bfloat16)
        y = jnp.dot(hi, s, preferred_element_type=jnp.float32)
        y = y + jnp.dot(mid, s, preferred_element_type=jnp.float32)
        y = y + jnp.dot(lo, s, preferred_element_type=jnp.float32)
    else:
        # bf16 (and narrower float) inputs are exactly representable in bf16.
        # TODO(synk): integer dtypes would need a non-MXU lane-gather path.
        y = jnp.dot(x.astype(jnp.bfloat16), s,
                    preferred_element_type=jnp.float32)

    for k in range(K):  # static unroll, K = stride**2 (tiny)
        o_ref[k, :, :] = y[:, k * ws_out:(k + 1) * ws_out].astype(o_ref.dtype)


def _pick_row_tile(rows, row_bytes, budget_bytes=2 * 1024 * 1024):
    """Largest multiple-of-8 divisor of `rows` whose block fits the budget."""
    if rows % 8 != 0:
        return rows  # full extent always satisfies the (8, 128) layout rule
    budget_rows = max(8, budget_bytes // max(row_bytes, 1))
    best = 8
    t = 8
    while t <= rows:
        if rows % t == 0 and t <= budget_rows:
            best = t
        t += 8
    return best


def reorg(x, stride=2):
    """Darknet Reorg: (B, C, H, W) -> (B, stride^2*C, H//stride, W//stride)."""
    B, C, H, W = x.shape
    hs = ws = stride
    assert H % hs == 0 and W % ws == 0
    Hs, Ws = H // hs, W // ws
    K = hs * ws
    rows = C * Hs          # kernel row index g = c*Hs + i
    hsw = hs * W           # kernel lane index m = p*W + w

    # Free, contiguous reshape: (B, C, H, W) -> (B, C*Hs, hs*W)
    x3 = x.reshape(B, rows, hsw)

    # Constant 0/1 permutation matrix: column k*Ws + j selects input lane
    # m = p*W + j*ws + q, where k = p*ws + q.
    s_np = np.zeros((hsw, hsw), dtype=np.float32)
    jj = np.arange(Ws)
    for p in range(hs):
        for q in range(ws):
            k = p * ws + q
            s_np[p * W + jj * ws + q, k * Ws + jj] = 1.0
    s = jnp.asarray(s_np, dtype=jnp.bfloat16)

    tg = _pick_row_tile(rows, hsw * x.dtype.itemsize)
    grid = (B, rows // tg)

    out4 = pl.pallas_call(
        _reorg_kernel,
        out_shape=jax.ShapeDtypeStruct((B, K, rows, Ws), x.dtype),
        grid=grid,
        in_specs=[
            # lane-dense input rows; last two block dims = (mult-of-8, full)
            pl.BlockSpec((None, tg, hsw), lambda b, g: (b, g, 0)),
            # constant permutation matrix, fetched once (block index constant)
            pl.BlockSpec((hsw, hsw), lambda b, g: (0, 0)),
        ],
        # lane-dense, contiguous output block: last dim = full output width Ws
        out_specs=pl.BlockSpec((None, K, tg, Ws), lambda b, g: (b, 0, g, 0)),
        compiler_params=pltpu.CompilerParams(
            dimension_semantics=("parallel", "parallel")),
    )(x3, s)

    # Free, contiguous regrouping: (B, K, C*Hs, Ws) -> (B, K*C, Hs, Ws)
    return out4.reshape(B, K * C, Hs, Ws)


def reorg_reference(x, stride=2):
    """Pure-JAX reference matching the PyTorch module."""
    B, C, H, W = x.shape
    hs = ws = stride
    x6 = x.reshape(B, C, H // hs, hs, W // ws, ws)
    x6 = jnp.transpose(x6, (0, 3, 5, 1, 2, 4))           # (B, hs, ws, C, Hs, Ws)
    return x6.reshape(B, hs * ws * C, H // hs, W // ws)


if __name__ == "__main__":
    key = jax.random.PRNGKey(0)
    B, C, H, W = 2, 4, 16, 16
    stride = 2
    x = jax.random.normal(key, (B, C, H, W), dtype=jnp.float32)

    out = reorg(x, stride=stride)
    out = jax.block_until_ready(out)

    ref = reorg_reference(x, stride=stride)
    assert out.shape == (B, stride * stride * C, H // stride, W // stride), \
        f"bad shape {out.shape}"
    assert jnp.allclose(out, ref, atol=1e-6, rtol=1e-6), "mismatch vs reference"
    print("KERNEL_OK")
</pallas_src>

<mosaic_0001>
module attributes {stable_mosaic.version = 11 : i64} {
  func.func @_reorg_kernel(%arg0: i32, %arg1: i32, %arg2: memref<1x32x32xf32, #tpu.memory_space<vmem>>, %arg3: memref<32x32xbf16, #tpu.memory_space<vmem>>, %arg4: memref<1x4x32x8xf32, #tpu.memory_space<vmem>>) attributes {dimension_semantics = [#tpu.dimension_semantics<parallel>, #tpu.dimension_semantics<parallel>], iteration_bounds = array<i64: 2, 1>, scalar_prefetch = 0 : i64, scratch_operands = 0 : i64, tpu.core_type = #tpu.core_type<tc>, window_params = [{transform_indices = @transform_0, window_bounds = array<i64: 1, 32, 32>}, {pipeline_mode = #tpu.pipeline_mode<synchronous>, transform_indices = @transform_1, window_bounds = array<i64: 32, 32>}, {transform_indices = @transform_2, window_bounds = array<i64: 1, 4, 32, 8>}]} {
    %c0 = arith.constant 0 : index
    %c0_0 = arith.constant 0 : index
    %c0_1 = arith.constant 0 : index
    %0 = vector.load %arg2[%c0, %c0_0, %c0_1] : memref<1x32x32xf32, #tpu.memory_space<vmem>>, vector<1x32x32xf32>
    %1 = vector.shape_cast %0 : vector<1x32x32xf32> to vector<32x32xf32>
    %c0_2 = arith.constant 0 : index
    %c0_3 = arith.constant 0 : index
    %2 = vector.load %arg3[%c0_2, %c0_3] : memref<32x32xbf16, #tpu.memory_space<vmem>>, vector<32x32xbf16>
    %3 = arith.truncf %1 : vector<32x32xf32> to vector<32x32xbf16>
    %4 = arith.extf %3 : vector<32x32xbf16> to vector<32x32xf32>
    %5 = arith.subf %1, %4 : vector<32x32xf32>
    %6 = arith.truncf %5 : vector<32x32xf32> to vector<32x32xbf16>
    %7 = arith.extf %6 : vector<32x32xbf16> to vector<32x32xf32>
    %8 = arith.subf %5, %7 : vector<32x32xf32>
    %9 = arith.truncf %8 : vector<32x32xf32> to vector<32x32xbf16>
    %cst = arith.constant dense<0.000000e+00> : vector<32x32xf32>
    %10 = tpu.matmul %3, %2, %cst {dimension_numbers = #tpu.dot_dimension_numbers<[1], [0], [0], [1], [0, 0, 1, 1], [], []>} : vector<32x32xbf16>, vector<32x32xbf16>, vector<32x32xf32> -> vector<32x32xf32>
    %cst_4 = arith.constant dense<0.000000e+00> : vector<32x32xf32>
    %11 = tpu.matmul %6, %2, %cst_4 {dimension_numbers = #tpu.dot_dimension_numbers<[1], [0], [0], [1], [0, 0, 1, 1], [], []>} : vector<32x32xbf16>, vector<32x32xbf16>, vector<32x32xf32> -> vector<32x32xf32>
    %12 = arith.addf %10, %11 : vector<32x32xf32>
    %cst_5 = arith.constant dense<0.000000e+00> : vector<32x32xf32>
    %13 = tpu.matmul %9, %2, %cst_5 {dimension_numbers = #tpu.dot_dimension_numbers<[1], [0], [0], [1], [0, 0, 1, 1], [], []>} : vector<32x32xbf16>, vector<32x32xbf16>, vector<32x32xf32> -> vector<32x32xf32>
    %14 = arith.addf %12, %13 : vector<32x32xf32>
    %15 = vector.extract_strided_slice %14 {offsets = [0, 0], sizes = [32, 8], strides = [1, 1]} : vector<32x32xf32> to vector<32x8xf32>
    %c0_6 = arith.constant 0 : index
    %c0_7 = arith.constant 0 : index
    %c0_8 = arith.constant 0 : index
    %c0_9 = arith.constant 0 : index
    %16 = vector.load %arg4[%c0_6, %c0_7, %c0_8, %c0_9] : memref<1x4x32x8xf32, #tpu.memory_space<vmem>>, vector<1x1x32x8xf32>
    %17 = vector.shape_cast %16 : vector<1x1x32x8xf32> to vector<32x8xf32>
    %18 = vector.shape_cast %15 : vector<32x8xf32> to vector<1x1x32x8xf32>
    tpu.vector_store %arg4[%c0_6, %c0_7, %c0_8, %c0_9], %18 {strides = array<i32>} : memref<1x4x32x8xf32, #tpu.memory_space<vmem>>, vector<1x1x32x8xf32>,
    %19 = vector.extract_strided_slice %14 {offsets = [0, 8], sizes = [32, 8], strides = [1, 1]} : vector<32x32xf32> to vector<32x8xf32>
    %c0_10 = arith.constant 0 : index
    %c1 = arith.constant 1 : index
    %c0_11 = arith.constant 0 : index
    %c0_12 = arith.constant 0 : index
    %20 = vector.load %arg4[%c0_10, %c1, %c0_11, %c0_12] : memref<1x4x32x8xf32, #tpu.memory_space<vmem>>, vector<1x1x32x8xf32>
    %21 = vector.shape_cast %20 : vector<1x1x32x8xf32> to vector<32x8xf32>
    %22 = vector.shape_cast %19 : vector<32x8xf32> to vector<1x1x32x8xf32>
    tpu.vector_store %arg4[%c0_10, %c1, %c0_11, %c0_12], %22 {strides = array<i32>} : memref<1x4x32x8xf32, #tpu.memory_space<vmem>>, vector<1x1x32x8xf32>,
    %23 = vector.extract_strided_slice %14 {offsets = [0, 16], sizes = [32, 8], strides = [1, 1]} : vector<32x32xf32> to vector<32x8xf32>
    %c0_13 = arith.constant 0 : index
    %c2 = arith.constant 2 : index
    %c0_14 = arith.constant 0 : index
    %c0_15 = arith.constant 0 : index
    %24 = vector.load %arg4[%c0_13, %c2, %c0_14, %c0_15] : memref<1x4x32x8xf32, #tpu.memory_space<vmem>>, vector<1x1x32x8xf32>
    %25 = vector.shape_cast %24 : vector<1x1x32x8xf32> to vector<32x8xf32>
    %26 = vector.shape_cast %23 : vector<32x8xf32> to vector<1x1x32x8xf32>
    tpu.vector_store %arg4[%c0_13, %c2, %c0_14, %c0_15], %26 {strides = array<i32>} : memref<1x4x32x8xf32, #tpu.memory_space<vmem>>, vector<1x1x32x8xf32>,
    %27 = vector.extract_strided_slice %14 {offsets = [0, 24], sizes = [32, 8], strides = [1, 1]} : vector<32x32xf32> to vector<32x8xf32>
    %c0_16 = arith.constant 0 : index
    %c3 = arith.constant 3 : index
    %c0_17 = arith.constant 0 : index
    %c0_18 = arith.constant 0 : index
    %28 = vector.load %arg4[%c0_16, %c3, %c0_17, %c0_18] : memref<1x4x32x8xf32, #tpu.memory_space<vmem>>, vector<1x1x32x8xf32>
    %29 = vector.shape_cast %28 : vector<1x1x32x8xf32> to vector<32x8xf32>
    %30 = vector.shape_cast %27 : vector<32x8xf32> to vector<1x1x32x8xf32>
    tpu.vector_store %arg4[%c0_16, %c3, %c0_17, %c0_18], %30 {strides = array<i32>} : memref<1x4x32x8xf32, #tpu.memory_space<vmem>>, vector<1x1x32x8xf32>,
    return
  }
  func.func @transform_0(%arg0: i32, %arg1: i32) -> (i32, i32, i32) {
    %c0_i32 = arith.constant 0 : i32
    %c0_i32_0 = arith.constant 0 : i32
    return %arg0, %arg1, %c0_i32 : i32, i32, i32
  }
  func.func @transform_1(%arg0: i32, %arg1: i32) -> (i32, i32) {
    %c0_i32 = arith.constant 0 : i32
    %c0_i32_0 = arith.constant 0 : i32
    %c0_i32_1 = arith.constant 0 : i32
    return %c0_i32, %c0_i32_0 : i32, i32
  }
  func.func @transform_2(%arg0: i32, %arg1: i32) -> (i32, i32, i32, i32) {
    %c0_i32 = arith.constant 0 : i32
    %c0_i32_0 = arith.constant 0 : i32
    %c0_i32_1 = arith.constant 0 : i32
    return %arg0, %c0_i32, %arg1, %c0_i32_0 : i32, i32, i32, i32
  }
}

</mosaic_0001>

<bundles_post_ra>
// kernel: tpu_custom_call.1
= control target key start
LH: loop header
LB: loop body
LE: loop exit
PB: predicated region body
PF: predicated region fallthrough
CT: control target
= control target key end

     0   :  { %7 = vsyncpa [#allocation3], 0  ;;  %s939_s0 = inlined_call_operand.hbm [shape: f32[2,32,32], index: 0, kind: input, shape index: {}]   ;;  %s940_s1 = inlined_call_operand.hbm [shape: bf16[32,32], index: 1, kind: input, shape index: {}]   ;;  %s941_s2 = inlined_call_operand.vmem [shape: f32[2,4,32,8], index: 2, kind: output, shape index: {}]  }
   0x1   :  { %9 = vsyncpa [#allocation3 + $0x1], 0 }
   0x2   :  { %10 = vsyncpa [#allocation5], 0  ;;  %s782_s9 = smov 0   ;;  %s784_s10 = smov 0  }
   0x3   :  { %s786_s11 = smov 0   ;;  %s788_s12 = smov 0  }
   0x4   :  { %s790_s13 = smov 0   ;;  %s792_s14 = smov 0  }
   0x5 LB: > { %s523_s15 = sadd.s32 4294967295, %s757_s14   ;;  %p50_p0 = scmp.ne.s32.totalorder %s741_s10, %s737_s9  ;;  %s757_s14 = sphi %s792_s14, %s16_s14   ;;  %s753_s13 = sphi %s790_s13, %s950_s13   ;;  %s749_s12 = sphi %s788_s12, %s949_s12   ;;  %s745_s11 = sphi %s786_s11, %s948_s11   ;;  %s741_s10 = sphi %s784_s10, %s947_s10   ;;  %s737_s9 = sphi %s782_s9, %s946_s9  }
   0x6   : > { %p812_p1 = scmp.eq.s32.totalorder %s523_s15, 0  ;;  %p525_p2 = scmp.ge.s32.totalorder %s757_s14, 1 }
   0x7   : > { %p110_p3 = scmp.lt.s32.totalorder %s757_s14, 3  ;;  %s121_s20 = sshll.u32 %s940_s1, 4  ;;  %s122_s20 = int_to_ptr.hbm [resolvable:$true] %s121_s20 }
   0x8   : > { %p820_p4 = por %p812_p1, %p50_p0  ;;  %s759_s22 = smov [#allocation4]  }
   0x9   : > { %p827_p5 = pnand %p525_p2, %p110_p3  ;;  %s123_s23 = sshll.u32 %s759_s22, 4  ;;  %s124_s23 = int_to_ptr.vmem [resolvable:$true] %s123_s23 }
   0xa   : > { %s760_s24 = smov 64   ;;  %s761_s25 = smov 4  }
   0xb   : > { %p576_p6 = pneg %p827_p5  ;;  %s28_s26 = sadd.s32 1, %s753_s13 }
   0xc   : > { %p30_p8 = scmp.ge.s32.totalorder %s28_s26, 2  ;;  %s37_s27 = sadd.s32 1, %s745_s11 }
   0xd   : > { %p577_p7 = pnand %p576_p6, %p812_p1  ;;  %p44_p9 = scmp.ne.s32.totalorder %s745_s11, %s741_s10 }
   0xe   : > { %p45_p10 = scmp.eq.s32.totalorder %s757_s14, 0  ;;  %s952_s26 = smov (%p30_p8, %s28_s26), 0 }
   0xf   : > { %579 = dma.hbm_to_vmem [thread:$0]  (!%p577_p7), %s122_s20, 256, %s124_s23, [#allocation5], %s760_s24, %s760_s24, %s761_s25  }
  0x10   : > { %p842_p11 = por %p45_p10, %p44_p9  ;;  %p585_p12 = scmp.lt.s32.totalorder %s757_s14, 2 }
  0x11   : > { %s32_s29 = ssub.s32 %s753_s13, %s952_s26  ;;  %s137_s30 = sand.u32 1, %s745_s11  }
  0x12   : > { %p35_p13 = scmp.eq.s32.totalorder %s32_s29, 0  ;;  %s528_s3 = sshll.u32 %s137_s30, 5 }
  0x13   : > { %s564_s4 = sshll.u32 %s753_s13, 5  ;;  %s141_s15 = scalar_lea.vmem [#allocation2], %s528_s3 }
  0x14   : > { %s852_s5 = scalar_select %p35_p13, %s745_s11, %s37_s27  }
  0x15   : > { %s148_s8 = scalar_lea.hbm %s939_s0, %s564_s4  ;;  %s151_s18 = sshll.u32 %s141_s15, 4  ;;  %s152_s18 = int_to_ptr.vmem [resolvable:$true] %s151_s18 }
  0x16   : > { %s149_s9 = sshll.u32 %s148_s8, 4  ;;  %p581_p0 = pnand %p585_p12, %p842_p11  ;;  %s150_s9 = int_to_ptr.hbm [resolvable:$true] %s149_s9 }
  0x17   : > { %s138_s19 = scalar_lea.sflag [#allocation3], %s137_s30  ;;  %s762_s20 = smov 128  }
  0x18   : > { %s763_s22 = smov 8   ;;  %163 = sbr.rel (%p827_p5) target bundleno = 339 (0x153), region = 28 }
  0x19   : > { %583 = dma.hbm_to_vmem [thread:$0]  (!%p581_p0), %s150_s9, 512, %s152_s18, %s138_s19, %s762_s20, %s762_s20, %s763_s22  }
  0x1a   : > { %s165_s23 = sand.u32 (!%p827_p5), 1, %s741_s10  }
  0x1b   : > { %s532_s24 = sshll.u32 (!%p827_p5), %s165_s23, 5  ;;  %s166_s25 = scalar_lea.sflag (!%p827_p5), [#allocation3], %s165_s23 }
  0x1c   : > { %s169_s27 = scalar_lea.vmem (!%p827_p5), [#allocation2], %s532_s24 }
  0x1d   : > { %728 = dma.done.wait (%p820_p4), %s166_s25, 512  }
  0x1e   : > { %730 = vsyncadd (%p820_p4), %s166_s25, 4294966784 }
  0x1f   : > { %732 = dma.done.wait (%p812_p1), [#allocation5], 256  }
  0x20   : > { %734 = vsyncadd (%p812_p1), [#allocation5], 4294967040  ;;  %v567_v0 = vld [vmem:[#allocation4 + $0x8] sm:$0xff]  ;;  %v212_v1 = vld [vmem:[%s169_s27] sm:$0xff]  ;;  %vm268_vm0 = vcmask 261120   ;;  %p202_p1 = scmp.lt.s32.totalorder %s749_s12, 1 }
  0x21   : > { %v213_v2 = vld [vmem:[%s169_s27 + $0x8] sm:$0xff]  ;;  %v220_v3 = vpack.c.bf16 %v212_v1, %v212_v1  ;;  %v214_v4 = vld [vmem:[%s169_s27 + $0x10] sm:$0xff]  ;;  %v215_v5 = vld [vmem:[%s169_s27 + $0x18] sm:$0xff]  ;;  %316 = vmatpush.bf16.msra.mxu1 %v567_v0  ;;  %281 = vmatpush.bf16.msra.mxu0 %v567_v0  ;;  %vm358_vm1 = vcmask 64512   ;;  %s764_s29 = smov 112   ;;  %s765_s30 = smov 120  }
  0x22   : > { %v566_v6 = vld [vmem:[#allocation4] sm:$0xff]  ;;  %v221_v7 = vpack.c.bf16 %v213_v2, %v213_v2  ;;  %v222_v8 = vpack.c.bf16 %v214_v4, %v214_v4  ;;  %v223_v9 = vpack.c.bf16 %v215_v5, %v215_v5  ;;  %341 = vmatpush.bf16.msra.mxu2 %v567_v0  ;;  %568 = vmatpush.bf16.msra.mxu3 %v567_v0  ;;  %s954_s12 = smov (!%p202_p1, %s749_s12), 1 }
  0x23   : > { %v224_v10 = vunpack.c.l.bf16 %v220_v3  ;;  %v298_v11 = vunpack.c.l.b16 %v220_v3  ;;  %s565_s16 = sshll.u32 %s954_s12, 7  ;;  %s766_s12 = smov 104  }
  0x24   : > { %v225_v12 = vunpack.c.l.bf16 %v221_v7  ;;  %v299_v13 = vunpack.c.l.b16 %v221_v7  ;;  %v226_v14 = vunpack.c.l.bf16 %v222_v8  ;;  %v227_v15 = vunpack.c.l.bf16 %v223_v9  ;;  %s883_s28 = scalar_lea.vmem %s941_s2, %s565_s16 }
  0x25   : > { %v228_v16 = vsub.f32 %v212_v1, %v224_v10  ;;  %317 = vmatpush.bf16.msra.mxu1 %v566_v6  ;;  %282 = vmatpush.bf16.msra.mxu0 %v566_v6  ;;  %v300_v36 = vunpack.c.l.b16 %v222_v8  ;;  %v301_v37 = vunpack.c.l.b16 %v223_v9 }
  0x26   : > { %v302_v17 = vpack.c.b16 %v299_v13, %v298_v11  ;;  %v229_v18 = vsub.f32 %v213_v2, %v225_v12  ;;  %v230_v19 = vsub.f32 %v214_v4, %v226_v14  ;;  %342 = vmatpush.bf16.msra.mxu2 %v566_v6  ;;  %569 = vmatpush.bf16.msra.mxu3 %v566_v6 }
  0x27   : > { %v232_v20 = vpack.c.bf16 %v228_v16, %v228_v16  ;;  %v231_v21 = vsub.f32 %v215_v5, %v227_v15  ;;  %v303_v40 = vpack.c.b16 %v301_v37, %v300_v36 }
  0x28   : > { %v233_v22 = vpack.c.bf16 %v229_v18, %v229_v18  ;;  %v234_v23 = vpack.c.bf16 %v230_v19, %v230_v19  ;;  %546 = vmatmul.msk.bf16.vlgmr.msra.gmra.mxu1 %vm268_vm0, %v302_v17 }
  0x29   : > { %v250_v24 = vunpack.c.l.b16 %v232_v20  ;;  %v236_v25 = vunpack.c.l.bf16 %v232_v20  ;;  %v235_v26 = vpack.c.bf16 %v231_v21, %v231_v21 }
  0x2a   : > { %v251_v27 = vunpack.c.l.b16 %v233_v22  ;;  %v237_v28 = vunpack.c.l.bf16 %v233_v22  ;;  %v252_v29 = vunpack.c.l.b16 %v234_v23  ;;  %v238_v38 = vunpack.c.l.bf16 %v234_v23 }
  0x2b   : > { %v240_v30 = vsub.f32 %v228_v16, %v236_v25  ;;  %v253_v31 = vunpack.c.l.b16 %v235_v26  ;;  %v239_v39 = vunpack.c.l.bf16 %v235_v26 }
  0x2c   : > { %v254_v32 = vpack.c.b16 %v251_v27, %v250_v24  ;;  %v241_v33 = vsub.f32 %v229_v18, %v237_v28  ;;  %v242_v41 = vsub.f32 %v230_v19, %v238_v38 }
  0x2d   : > { %v255_v34 = vpack.c.b16 %v253_v31, %v252_v29  ;;  %v243_v42 = vsub.f32 %v231_v21, %v239_v39 }
  0x2e   : > { %544 = vmatmul.msk.bf16.vlgmr.msra.gmra.mxu0 %vm268_vm0, %v254_v32  ;;  %v244_v35 = vpack.c.bf16 %v241_v33, %v240_v30 }
  0x2f   : > { %545 = vmatmul.msk.bf16.vlgmr.msra.gmra.mxu3 %vm268_vm0, %v255_v34  ;;  %v245_v43 = vpack.c.bf16 %v243_v42, %v242_v41 }
  0x30   : > { %548 = vmatmul.msk.bf16.vlgmr.msra.gmra.mxu2 %vm268_vm0, %v244_v35 }
  0x38   : > { %547 = vmatmul.msk.bf16.gmra.mxu1 %vm268_vm0, %v303_v40 }
  0x40   : > { %549 = vmatmul.msk.bf16.gmra.mxu2 %vm268_vm0, %v245_v43 }
  0xa5   : > { %v319_v44 = vpop.f32.mrf.mxu1 }
  0xab   : > { %v284_v45 = vpop.f32.mrf.mxu0 }
  0xac   : > { %v320_v46 = vadd.f32 %v319_v44, %v284_v45 }
  0xad   : > { %v321_v47 = vpop.f32.mrf.mxu1 }
  0xb2   : > { %v289_v54 = vpop.f32.mrf.mxu3 }
  0xb3   : > { %v344_v48 = vpop.f32.mrf.mxu2  ;;  %v286_v50 = vpop.f32.mrf.mxu0 }
  0xb4   : > { %v354_v49 = vadd.f32 %v344_v48, %v320_v46  ;;  %v322_v51 = vadd.f32 %v321_v47, %v286_v50 }
  0xb5   : > { %v324_v55 = vpop.f32.mrf.mxu1 }
  0xb6   : > { %359 = vst.msk [vmem:[%s883_s28] sm:$0xff] %vm358_vm1, %v354_v49  ;;  %384 = vrot.lane.b32.xlu2 %v354_v49, %s764_s29  ;;  %367 = vrot.lane.b32.xlu0 %v354_v49, %s765_s30  ;;  %v325_v56 = vadd.f32 %v324_v55, %v289_v54 }
  0xba   : > { %v291_v59 = vpop.f32.mrf.mxu3 }
  0xbb   : > { %v346_v52 = vpop.f32.mrf.mxu2 }
  0xbc   : > { %v355_v53 = vadd.f32 %v346_v52, %v322_v51 }
  0xbd   : > { %v326_v60 = vpop.f32.mrf.mxu1 }
  0xbe   : > { %360 = vst.msk [vmem:[%s883_s28 + $0x8] sm:$0xff] %vm358_vm1, %v355_v53  ;;  %401 = vrot.lane.b32.xlu2 %v354_v49, %s766_s12  ;;  %369 = vrot.lane.b32.xlu0 %v355_v53, %s765_s30  ;;  %v327_v61 = vadd.f32 %v326_v60, %v291_v59 }
  0xc3   : > { %v349_v57 = vpop.f32.mrf.mxu2 }
  0xc4   : > { %v356_v58 = vadd.f32 %v349_v57, %v325_v56 }
  0xc6   : > { %361 = vst.msk [vmem:[%s883_s28 + $0x10] sm:$0xff] %vm358_vm1, %v356_v58  ;;  %386 = vrot.lane.b32.xlu2 %v355_v53, %s764_s29  ;;  %388 = vrot.lane.b32.xlu0 %v356_v58, %s764_s29 }
  0xc7   : > { %371 = vrot.lane.b32.xlu1 %v356_v58, %s765_s30 }
  0xcb   : > { %v351_v62 = vpop.f32.mrf.mxu2 }
  0xcc   : > { %v357_v63 = vadd.f32 %v351_v62, %v327_v61 }
  0xce   : > { %362 = vst.msk [vmem:[%s883_s28 + $0x18] sm:$0xff] %vm358_vm1, %v357_v63  ;;  %403 = vrot.lane.b32.xlu0 %v355_v53, %s766_s12  ;;  %407 = vrot.lane.b32.xlu2 %v357_v63, %s766_s12 }
  0xcf   : > { %373 = vrot.lane.b32.xlu1 %v357_v63, %s765_s30 }
  0xd7   : > { %390 = vrot.lane.b32.xlu1 %v357_v63, %s764_s29 }
  0xdf   : > { %405 = vrot.lane.b32.xlu1 %v356_v58, %s766_s12 }
 0x110   : > { %v385_v0 = vpop.permute.xlu2 %384 }
 0x111   : > { %554 = vst.msk [vmem:[%s883_s28 + $0x40] sm:$0xff] %vm358_vm1, %v385_v0 }
 0x118   : > { %v402_v1 = vpop.permute.xlu2 %401 }
 0x119   : > { %558 = vst.msk [vmem:[%s883_s28 + $0x60] sm:$0xff] %vm358_vm1, %v402_v1 }
 0x120   : > { %v387_v2 = vpop.permute.xlu2 %386 }
 0x121   : > { %555 = vst.msk [vmem:[%s883_s28 + $0x48] sm:$0xff] %vm358_vm1, %v387_v2 }
 0x128   : > { %v368_v3 = vpop.permute.xlu0 %367  ;;  %v408_v4 = vpop.permute.xlu2 %407 }
 0x129   : > { %550 = vst.msk [vmem:[%s883_s28 + $0x20] sm:$0xff] %vm358_vm1, %v368_v3 }
 0x12a   : > { %561 = vst.msk [vmem:[%s883_s28 + $0x78] sm:$0xff] %vm358_vm1, %v408_v4 }
 0x130   : > { %v370_v5 = vpop.permute.xlu0 %369 }
 0x131   : > { %551 = vst.msk [vmem:[%s883_s28 + $0x28] sm:$0xff] %vm358_vm1, %v370_v5 }
 0x138   : > { %v389_v6 = vpop.permute.xlu0 %388 }
 0x139   : > { %556 = vst.msk [vmem:[%s883_s28 + $0x50] sm:$0xff] %vm358_vm1, %v389_v6  ;;  %v372_v7 = vpop.permute.xlu1 %371 }
 0x13a   : > { %552 = vst.msk [vmem:[%s883_s28 + $0x30] sm:$0xff] %vm358_vm1, %v372_v7 }
 0x140   : > { %v404_v8 = vpop.permute.xlu0 %403 }
 0x141   : > { %559 = vst.msk [vmem:[%s883_s28 + $0x68] sm:$0xff] %vm358_vm1, %v404_v8  ;;  %v374_v9 = vpop.permute.xlu1 %373 }
 0x142   : > { %553 = vst.msk [vmem:[%s883_s28 + $0x38] sm:$0xff] %vm358_vm1, %v374_v9 }
 0x149   : > { %v391_v10 = vpop.permute.xlu1 %390 }
 0x14a   : > { %557 = vst.msk [vmem:[%s883_s28 + $0x58] sm:$0xff] %vm358_vm1, %v391_v10 }
 0x151   : > { %v406_v11 = vpop.permute.xlu1 %405 }
 0x152   : > { %560 = vst.msk [vmem:[%s883_s28 + $0x70] sm:$0xff] %vm358_vm1, %v406_v11 }
 0x153 PF: > { %s16_s14 = sadd.s32 1, %s757_s14   ;;  %s946_s9 = smov %s741_s10 }
 0x154   : > { %p13_p2 = scmp.ge.s32.totalorder %s16_s14, 4   ;;  %s947_s10 = smov %s745_s11 }
 0x155   : > { %s948_s11 = smov %s852_s5  ;;  %s949_s12 = smov %s753_s13 }
 0x156   : > { %s950_s13 = smov %s952_s26  ;;  %15 = sbr.rel (!%p13_p2) target bundleno = 5 (0x5), region = 75 }
 0x15b   :  { %448 = vsyncpa [#allocation3], 1 }
 0x15c   :  { %450 = vsyncpa [#allocation3 + $0x1], 1 }
 0x15d   :  { %451 = vsyncpa [#allocation5], 1 }

</bundles_post_ra>
